<compile_context>
chip_gen: v7x
topology: tpu7x:2x2x1
jax: 0.10.0
libtpu: 0.0.40
codegen_flags: <defaults>
</compile_context>

<pallas_src>
import functools

import jax
import jax.numpy as jnp
from jax import lax
from jax.experimental import pallas as pl
from jax.experimental.pallas import tpu as pltpu


# ----------------------------- fused Pallas kernel ---------------------------

def _make_bottleneck_kernel(H, W, TH):
    """Kernel closure over static spatial sizes: H, W (image), TH (rows per tile)."""
    THW = TH * W

    def kernel(x_ref, w1_ref, s1_ref, b1_ref, w2_ref, s2_ref, b2_ref,
               w3_ref, s3_ref, b3_ref, o_ref):
        # x_ref : (1, H*W, Cin)   full image of this batch element (revisited across tiles)
        # w1    : (Cin, P)  w2 : (9, P, P)  w3 : (P, Cout)   s*/b*: (1, C) folded BN
        # o_ref : (1, TH*W, Cout) this tile's output rows
        t = pl.program_id(1)
        nT = pl.num_programs(1)
        P = w1_ref.shape[1]
        cdt = w2_ref.dtype
        f32 = jnp.float32

        # ---- load tile rows plus a 1-image-row halo above/below (clamped reads) ----
        r0 = pl.multiple_of(t * THW, THW)
        top = pl.multiple_of(jnp.maximum(r0 - W, 0), W)
        bot = pl.multiple_of(jnp.minimum(r0 + THW, (H - 1) * W), W)

        x_main = x_ref[0, pl.ds(r0, THW), :]          # (THW, Cin)  also the residual
        x_top = x_ref[0, pl.ds(top, W), :]            # (W,  Cin)
        x_bot = x_ref[0, pl.ds(bot, W), :]            # (W,  Cin)

        def conv1_bn_relu(v):                         # 1x1 conv + bn1 + relu (f32 accum)
            y = jnp.dot(v, w1_ref[...], preferred_element_type=f32)
            return jnp.maximum(y * s1_ref[...] + b1_ref[...], 0.0)

        # Halo rows that fall outside the image must become the 3x3 conv's zero padding,
        # i.e. zero AFTER bn1/relu (bn bias would otherwise leak in).
        o1_top = conv1_bn_relu(x_top) * (t > 0).astype(f32)
        o1_main = conv1_bn_relu(x_main)
        o1_bot = conv1_bn_relu(x_bot) * (t < nT - 1).astype(f32)

        # Flattened halo'd slab with 8 zero guard rows on each end so every tap slice
        # is in bounds (guard / wrapped elements are always masked out below).
        zpad = jnp.zeros((8, P), f32)
        o1_ext = jnp.concatenate([zpad, o1_top, o1_main, o1_bot, zpad],
                                 axis=0).astype(cdt)  # (THW + 2W + 16, P)

        # Column-validity masks implementing the conv2 zero padding along W
        # (row-major flattening wraps column -1 / W into adjacent rows).
        col = lax.broadcasted_iota(jnp.int32, (THW, 1), 0) % W
        mask_l = (col > 0).astype(cdt)                # kx = 0 tap (dx = -1)
        mask_r = (col < W - 1).astype(cdt)            # kx = 2 tap (dx = +1)

        # ---- conv2: 3x3, pad=1, stride=1 as 9 shifted matmuls, f32 accumulation ----
        acc = jnp.zeros((THW, P), f32)
        for ky in range(3):
            for kx in range(3):
                start = 7 + ky * W + kx               # output row m reads ext row m+start
                patch = o1_ext[start:start + THW, :]
                if kx == 0:
                    patch = patch * mask_l
                elif kx == 2:
                    patch = patch * mask_r
                acc = acc + jnp.dot(patch, w2_ref[3 * ky + kx],
                                    preferred_element_type=f32)

        # ---- bn2 + relu + conv3 (1x1) + bn3 + residual + relu ----
        o2 = jnp.maximum(acc * s2_ref[...] + b2_ref[...], 0.0).astype(cdt)
        o3 = jnp.dot(o2, w3_ref[...], preferred_element_type=f32)
        o3 = o3 * s3_ref[...] + b3_ref[...]
        out = jnp.maximum(o3 + x_main.astype(f32), 0.0)
        o_ref[0] = out.astype(o_ref.dtype)

    return kernel


# --------------------------------- wrapper ------------------------------------

def bottleneck_forward(x_nchw, params, *, tile_h=None, compute_dtype=None):
    """x_nchw: (N, Cin, H, W), Cin == 4 * planes (no-downsample Bottleneck).

    compute_dtype: optional (e.g. jnp.bfloat16 on v6e/v7x) dtype for activations/weights
    entering the MXU; BN scale/bias and all accumulations stay in float32.
    """
    N, Cin, H, W = x_nchw.shape
    HW = H * W
    P = params["w1"].shape[0]               # planes
    Cout = 4 * P
    assert Cin == Cout, "no-downsample Bottleneck requires inplanes == 4*planes"

    if tile_h is None:                      # ~256 flattened rows per tile
        tile_h = min(H, max(1, 256 // max(W, 1)))
        while H % tile_h:
            tile_h -= 1
    assert 1 <= tile_h <= H and H % tile_h == 0
    TH, nT, THW = tile_h, H // tile_h, tile_h * W

    out_dtype = x_nchw.dtype
    cdt = jnp.dtype(compute_dtype) if compute_dtype is not None else jnp.dtype(out_dtype)

    # NCHW -> (N, HW, C) channels-last flattened.
    # TODO(synk): if the surrounding model keeps activations channels-last, drop this transpose.
    x_flat = jnp.transpose(x_nchw, (0, 2, 3, 1)).reshape(N, HW, Cin).astype(cdt)

    # Fold eval-mode BN into per-channel scale/bias (kept in f32).
    def bn_fold(g, b, m, v, eps=1e-5):
        s = g / jnp.sqrt(v + eps)
        return (s.reshape(1, -1).astype(jnp.float32),
                (b - m * s).reshape(1, -1).astype(jnp.float32))

    s1, b1 = bn_fold(*params["bn1"])
    s2, b2 = bn_fold(*params["bn2"])
    s3, b3 = bn_fold(*params["bn3"])

    # Conv weights -> matmul weights.
    w1 = jnp.transpose(params["w1"][:, :, 0, 0], (1, 0)).astype(cdt)            # (Cin, P)
    w2 = jnp.transpose(params["w2"], (2, 3, 1, 0)).reshape(9, P, P).astype(cdt)  # tap 3*ky+kx
    w3 = jnp.transpose(params["w3"][:, :, 0, 0], (1, 0)).astype(cdt)            # (P, Cout)

    full = lambda shape: pl.BlockSpec(shape, lambda n, t: (0,) * len(shape))
    isz = jnp.dtype(cdt).itemsize
    osz = jnp.dtype(out_dtype).itemsize

    out_flat = pl.pallas_call(
        _make_bottleneck_kernel(H, W, TH),
        out_shape=jax.ShapeDtypeStruct((N, HW, Cout), out_dtype),
        grid=(N, nT),
        in_specs=[
            # full image per batch element; constant over t => fetched once per n
            pl.BlockSpec((1, HW, Cin), lambda n, t: (n, 0, 0)),
            full((Cin, P)), full((1, P)), full((1, P)),
            full((9, P, P)), full((1, P)), full((1, P)),
            full((P, Cout)), full((1, Cout)), full((1, Cout)),
        ],
        out_specs=pl.BlockSpec((1, THW, Cout), lambda n, t: (n, t, 0)),
        compiler_params=pltpu.CompilerParams(
            dimension_semantics=("parallel", "parallel"),
            vmem_limit_bytes=48 * 1024 * 1024),
        cost_estimate=pl.CostEstimate(
            flops=2 * N * HW * (Cin * P + 9 * P * P + P * Cout),
            transcendentals=0,
            bytes_accessed=N * HW * (Cin * isz + Cout * osz)
                           + (w1.size + w2.size + w3.size) * isz),
    )(x_flat, w1, s1, b1, w2, s2, b2, w3, s3, b3)

    # (N, HW, Cout) -> NCHW
    return jnp.transpose(out_flat.reshape(N, H, W, Cout), (0, 3, 1, 2))


# ------------------------- pure-JAX reference --------------------------------

def bottleneck_reference(x, params):
    def conv(x, w, pad=0):
        return jax.lax.conv_general_dilated(
            x, w, (1, 1), [(pad, pad), (pad, pad)],
            dimension_numbers=("NCHW", "OIHW", "NCHW"))

    def bn(x, g, b, m, v, eps=1e-5):
        s = g / jnp.sqrt(v + eps)
        return x * s[None, :, None, None] + (b - m * s)[None, :, None, None]

    o = jax.nn.relu(bn(conv(x, params["w1"]), *params["bn1"]))
    o = jax.nn.relu(bn(conv(o, params["w2"], pad=1), *params["bn2"]))
    o = bn(conv(o, params["w3"]), *params["bn3"])
    return jax.nn.relu(o + x)


# --------------------------------- main ---------------------------------------

if __name__ == "__main__":
    # Small shapes consistent with the module: planes=4, inplanes=4*planes=16, H=W=16.
    N, planes, H, W = 2, 4, 16, 16
    inplanes = planes * 4

    key = jax.random.PRNGKey(0)
    ks = jax.random.split(key, 16)

    def bn_params(k, c):
        k1, k2, k3, k4 = jax.random.split(k, 4)
        gamma = 1.0 + 0.1 * jax.random.normal(k1, (c,), jnp.float32)
        beta = 0.1 * jax.random.normal(k2, (c,), jnp.float32)
        mean = 0.1 * jax.random.normal(k3, (c,), jnp.float32)
        var = jax.random.uniform(k4, (c,), jnp.float32, 0.5, 1.5)
        return (gamma, beta, mean, var)

    params = {
        "w1": 0.2 * jax.random.normal(ks[0], (planes, inplanes, 1, 1), jnp.float32),
        "w2": 0.2 * jax.random.normal(ks[1], (planes, planes, 3, 3), jnp.float32),
        "w3": 0.2 * jax.random.normal(ks[2], (planes * 4, planes, 1, 1), jnp.float32),
        "bn1": bn_params(ks[3], planes),
        "bn2": bn_params(ks[4], planes),
        "bn3": bn_params(ks[5], planes * 4),
    }

    x = jax.random.normal(ks[6], (N, inplanes, H, W), jnp.float32)

    # tile_h=4 -> grid (N=2, nT=4): exercises first/middle/last tiles and the row halos.
    fwd = jax.jit(functools.partial(bottleneck_forward, params=params, tile_h=4))
    out = jax.block_until_ready(fwd(x))

    ref = bottleneck_reference(x, params)
    assert out.shape == ref.shape, (out.shape, ref.shape)
    err = float(jnp.max(jnp.abs(out - ref)))
    assert jnp.allclose(out, ref, atol=2e-4, rtol=2e-4), err

    print("KERNEL_OK")
</pallas_src>

<mosaic_0001>
module attributes {stable_mosaic.version = 11 : i64} {
  func.func @kernel(%arg0: i32, %arg1: i32, %arg2: memref<1x256x16xf32, #tpu.memory_space<vmem>>, %arg3: memref<16x4xf32, #tpu.memory_space<vmem>>, %arg4: memref<1x4xf32, #tpu.memory_space<vmem>>, %arg5: memref<1x4xf32, #tpu.memory_space<vmem>>, %arg6: memref<9x4x4xf32, #tpu.memory_space<vmem>>, %arg7: memref<1x4xf32, #tpu.memory_space<vmem>>, %arg8: memref<1x4xf32, #tpu.memory_space<vmem>>, %arg9: memref<4x16xf32, #tpu.memory_space<vmem>>, %arg10: memref<1x16xf32, #tpu.memory_space<vmem>>, %arg11: memref<1x16xf32, #tpu.memory_space<vmem>>, %arg12: memref<1x64x16xf32, #tpu.memory_space<vmem>>) attributes {dimension_semantics = [#tpu.dimension_semantics<parallel>, #tpu.dimension_semantics<parallel>], iteration_bounds = array<i64: 2, 4>, scalar_prefetch = 0 : i64, scratch_operands = 0 : i64, tpu.core_type = #tpu.core_type<tc>, window_params = [{transform_indices = @transform_0, window_bounds = array<i64: 1, 256, 16>}, {pipeline_mode = #tpu.pipeline_mode<synchronous>, transform_indices = @transform_1, window_bounds = array<i64: 16, 4>}, {pipeline_mode = #tpu.pipeline_mode<synchronous>, transform_indices = @transform_2, window_bounds = array<i64: 1, 4>}, {pipeline_mode = #tpu.pipeline_mode<synchronous>, transform_indices = @transform_3, window_bounds = array<i64: 1, 4>}, {pipeline_mode = #tpu.pipeline_mode<synchronous>, transform_indices = @transform_4, window_bounds = array<i64: 9, 4, 4>}, {pipeline_mode = #tpu.pipeline_mode<synchronous>, transform_indices = @transform_5, window_bounds = array<i64: 1, 4>}, {pipeline_mode = #tpu.pipeline_mode<synchronous>, transform_indices = @transform_6, window_bounds = array<i64: 1, 4>}, {pipeline_mode = #tpu.pipeline_mode<synchronous>, transform_indices = @transform_7, window_bounds = array<i64: 4, 16>}, {pipeline_mode = #tpu.pipeline_mode<synchronous>, transform_indices = @transform_8, window_bounds = array<i64: 1, 16>}, {pipeline_mode = #tpu.pipeline_mode<synchronous>, transform_indices = @transform_9, window_bounds = array<i64: 1, 16>}, {transform_indices = @transform_10, window_bounds = array<i64: 1, 64, 16>}]} {
    %c64_i32 = arith.constant 64 : i32
    %0 = arith.muli %arg1, %c64_i32 : i32
    %1 = tpu.assume_multiple %0, 64 : i32
    %c16_i32 = arith.constant 16 : i32
    %2 = arith.subi %1, %c16_i32 : i32
    %c0_i32 = arith.constant 0 : i32
    %3 = arith.maxsi %2, %c0_i32 : i32
    %4 = tpu.assume_multiple %3, 16 : i32
    %c64_i32_0 = arith.constant 64 : i32
    %5 = arith.addi %1, %c64_i32_0 : i32
    %c240_i32 = arith.constant 240 : i32
    %6 = arith.minsi %5, %c240_i32 : i32
    %7 = tpu.assume_multiple %6, 16 : i32
    %c0 = arith.constant 0 : index
    %8 = arith.index_cast %1 : i32 to index
    %c0_1 = arith.constant 0 : index
    %9 = vector.load %arg2[%c0, %8, %c0_1] : memref<1x256x16xf32, #tpu.memory_space<vmem>>, vector<1x64x16xf32>
    %10 = vector.shape_cast %9 : vector<1x64x16xf32> to vector<64x16xf32>
    %c0_2 = arith.constant 0 : index
    %11 = arith.index_cast %4 : i32 to index
    %c0_3 = arith.constant 0 : index
    %12 = vector.load %arg2[%c0_2, %11, %c0_3] : memref<1x256x16xf32, #tpu.memory_space<vmem>>, vector<1x16x16xf32>
    %13 = vector.shape_cast %12 : vector<1x16x16xf32> to vector<16x16xf32>
    %c0_4 = arith.constant 0 : index
    %14 = arith.index_cast %7 : i32 to index
    %c0_5 = arith.constant 0 : index
    %15 = vector.load %arg2[%c0_4, %14, %c0_5] : memref<1x256x16xf32, #tpu.memory_space<vmem>>, vector<1x16x16xf32>
    %16 = vector.shape_cast %15 : vector<1x16x16xf32> to vector<16x16xf32>
    %c0_6 = arith.constant 0 : index
    %c0_7 = arith.constant 0 : index
    %17 = vector.load %arg3[%c0_6, %c0_7] : memref<16x4xf32, #tpu.memory_space<vmem>>, vector<16x4xf32>
    %cst = arith.constant dense<0.000000e+00> : vector<16x4xf32>
    %18 = tpu.matmul %13, %17, %cst {dimension_numbers = #tpu.dot_dimension_numbers<[1], [0], [0], [1], [0, 0, 1, 1], [], []>} : vector<16x16xf32>, vector<16x4xf32>, vector<16x4xf32> -> vector<16x4xf32>
    %c0_8 = arith.constant 0 : index
    %c0_9 = arith.constant 0 : index
    %19 = vector.load %arg4[%c0_8, %c0_9] : memref<1x4xf32, #tpu.memory_space<vmem>>, vector<1x4xf32>
    %20 = vector.broadcast %19 : vector<1x4xf32> to vector<16x4xf32>
    %21 = arith.mulf %18, %20 : vector<16x4xf32>
    %c0_10 = arith.constant 0 : index
    %c0_11 = arith.constant 0 : index
    %22 = vector.load %arg5[%c0_10, %c0_11] : memref<1x4xf32, #tpu.memory_space<vmem>>, vector<1x4xf32>
    %23 = vector.broadcast %22 : vector<1x4xf32> to vector<16x4xf32>
    %24 = arith.addf %21, %23 : vector<16x4xf32>
    %cst_12 = arith.constant 0.000000e+00 : f32
    %25 = vector.broadcast %cst_12 : f32 to vector<16x4xf32>
    %26 = arith.maximumf %24, %25 : vector<16x4xf32>
    %c0_i32_13 = arith.constant 0 : i32
    %27 = arith.cmpi sgt, %arg1, %c0_i32_13 : i32
    %28 = arith.extui %27 : i1 to i32
    %29 = arith.sitofp %28 : i32 to f32
    %30 = vector.broadcast %29 : f32 to vector<16x4xf32>
    %31 = arith.mulf %26, %30 : vector<16x4xf32>
    %c0_14 = arith.constant 0 : index
    %c0_15 = arith.constant 0 : index
    %32 = vector.load %arg3[%c0_14, %c0_15] : memref<16x4xf32, #tpu.memory_space<vmem>>, vector<16x4xf32>
    %cst_16 = arith.constant dense<0.000000e+00> : vector<64x4xf32>
    %33 = tpu.matmul %10, %32, %cst_16 {dimension_numbers = #tpu.dot_dimension_numbers<[1], [0], [0], [1], [0, 0, 1, 1], [], []>} : vector<64x16xf32>, vector<16x4xf32>, vector<64x4xf32> -> vector<64x4xf32>
    %c0_17 = arith.constant 0 : index
    %c0_18 = arith.constant 0 : index
    %34 = vector.load %arg4[%c0_17, %c0_18] : memref<1x4xf32, #tpu.memory_space<vmem>>, vector<1x4xf32>
    %35 = vector.broadcast %34 : vector<1x4xf32> to vector<64x4xf32>
    %36 = arith.mulf %33, %35 : vector<64x4xf32>
    %c0_19 = arith.constant 0 : index
    %c0_20 = arith.constant 0 : index
    %37 = vector.load %arg5[%c0_19, %c0_20] : memref<1x4xf32, #tpu.memory_space<vmem>>, vector<1x4xf32>
    %38 = vector.broadcast %37 : vector<1x4xf32> to vector<64x4xf32>
    %39 = arith.addf %36, %38 : vector<64x4xf32>
    %cst_21 = arith.constant 0.000000e+00 : f32
    %40 = vector.broadcast %cst_21 : f32 to vector<64x4xf32>
    %41 = arith.maximumf %39, %40 : vector<64x4xf32>
    %c0_22 = arith.constant 0 : index
    %c0_23 = arith.constant 0 : index
    %42 = vector.load %arg3[%c0_22, %c0_23] : memref<16x4xf32, #tpu.memory_space<vmem>>, vector<16x4xf32>
    %cst_24 = arith.constant dense<0.000000e+00> : vector<16x4xf32>
    %43 = tpu.matmul %16, %42, %cst_24 {dimension_numbers = #tpu.dot_dimension_numbers<[1], [0], [0], [1], [0, 0, 1, 1], [], []>} : vector<16x16xf32>, vector<16x4xf32>, vector<16x4xf32> -> vector<16x4xf32>
    %c0_25 = arith.constant 0 : index
    %c0_26 = arith.constant 0 : index
    %44 = vector.load %arg4[%c0_25, %c0_26] : memref<1x4xf32, #tpu.memory_space<vmem>>, vector<1x4xf32>
    %45 = vector.broadcast %44 : vector<1x4xf32> to vector<16x4xf32>
    %46 = arith.mulf %43, %45 : vector<16x4xf32>
    %c0_27 = arith.constant 0 : index
    %c0_28 = arith.constant 0 : index
    %47 = vector.load %arg5[%c0_27, %c0_28] : memref<1x4xf32, #tpu.memory_space<vmem>>, vector<1x4xf32>
    %48 = vector.broadcast %47 : vector<1x4xf32> to vector<16x4xf32>
    %49 = arith.addf %46, %48 : vector<16x4xf32>
    %cst_29 = arith.constant 0.000000e+00 : f32
    %50 = vector.broadcast %cst_29 : f32 to vector<16x4xf32>
    %51 = arith.maximumf %49, %50 : vector<16x4xf32>
    %c3_i32 = arith.constant 3 : i32
    %52 = arith.cmpi slt, %arg1, %c3_i32 : i32
    %53 = arith.extui %52 : i1 to i32
    %54 = arith.sitofp %53 : i32 to f32
    %55 = vector.broadcast %54 : f32 to vector<16x4xf32>
    %56 = arith.mulf %51, %55 : vector<16x4xf32>
    %cst_30 = arith.constant 0.000000e+00 : f32
    %57 = vector.broadcast %cst_30 : f32 to vector<8x4xf32>
    %58 = tpu.concatenate %57, %31, %41, %56, %57 in 0 : vector<8x4xf32>, vector<16x4xf32>, vector<64x4xf32>, vector<16x4xf32>, vector<8x4xf32> -> vector<112x4xf32>
    %59 = tpu.iota {dimensions = array<i32: 0>} : vector<64x1xi32>
    %c16_i32_31 = arith.constant 16 : i32
    %c0_i32_32 = arith.constant 0 : i32
    %60 = arith.cmpi eq, %c16_i32_31, %c0_i32_32 : i32
    %c1_i32 = arith.constant 1 : i32
    %61 = arith.select %60, %c1_i32, %c16_i32_31 : i32
    %62 = vector.broadcast %61 : i32 to vector<64x1xi32>
    %63 = arith.remsi %59, %62 : vector<64x1xi32>
    %c0_i32_33 = arith.constant 0 : i32
    %64 = vector.broadcast %c0_i32_33 : i32 to vector<64x1xi32>
    %65 = arith.cmpi ne, %63, %64 : vector<64x1xi32>
    %c0_i32_34 = arith.constant 0 : i32
    %66 = vector.broadcast %c0_i32_34 : i32 to vector<64x1xi32>
    %67 = arith.cmpi slt, %63, %66 : vector<64x1xi32>
    %c0_i32_35 = arith.constant 0 : i32
    %68 = arith.cmpi slt, %61, %c0_i32_35 : i32
    %69 = vector.broadcast %68 : i1 to vector<64x1xi1>
    %70 = vector.broadcast %69 : vector<64x1xi1> to vector<64x1xi1>
    %71 = arith.xori %67, %70 : vector<64x1xi1>
    %72 = arith.andi %71, %65 : vector<64x1xi1>
    %73 = vector.broadcast %61 : i32 to vector<64x1xi32>
    %74 = arith.addi %63, %73 : vector<64x1xi32>
    %75 = arith.select %72, %74, %63 : vector<64x1xi1>, vector<64x1xi32>
    %c0_i32_36 = arith.constant 0 : i32
    %76 = vector.broadcast %c0_i32_36 : i32 to vector<64x1xi32>
    %77 = arith.cmpi sgt, %75, %76 : vector<64x1xi32>
    %78 = arith.extui %77 : vector<64x1xi1> to vector<64x1xi32>
    %79 = arith.sitofp %78 : vector<64x1xi32> to vector<64x1xf32>
    %c15_i32 = arith.constant 15 : i32
    %80 = vector.broadcast %c15_i32 : i32 to vector<64x1xi32>
    %81 = arith.cmpi slt, %75, %80 : vector<64x1xi32>
    %82 = arith.extui %81 : vector<64x1xi1> to vector<64x1xi32>
    %83 = arith.sitofp %82 : vector<64x1xi32> to vector<64x1xf32>
    %cst_37 = arith.constant 0.000000e+00 : f32
    %84 = vector.broadcast %cst_37 : f32 to vector<64x4xf32>
    %85 = vector.extract_strided_slice %58 {offsets = [7, 0], sizes = [64, 4], strides = [1, 1]} : vector<112x4xf32> to vector<64x4xf32>
    %86 = vector.broadcast %79 : vector<64x1xf32> to vector<64x4xf32>
    %87 = arith.mulf %85, %86 : vector<64x4xf32>
    %c0_38 = arith.constant 0 : index
    %c0_39 = arith.constant 0 : index
    %c0_40 = arith.constant 0 : index
    %88 = vector.load %arg6[%c0_38, %c0_39, %c0_40] : memref<9x4x4xf32, #tpu.memory_space<vmem>>, vector<1x4x4xf32>
    %89 = vector.shape_cast %88 : vector<1x4x4xf32> to vector<4x4xf32>
    %cst_41 = arith.constant dense<0.000000e+00> : vector<64x4xf32>
    %90 = tpu.matmul %87, %89, %cst_41 {dimension_numbers = #tpu.dot_dimension_numbers<[1], [0], [0], [1], [0, 0, 1, 1], [], []>} : vector<64x4xf32>, vector<4x4xf32>, vector<64x4xf32> -> vector<64x4xf32>
    %91 = arith.addf %84, %90 : vector<64x4xf32>
    %92 = vector.extract_strided_slice %58 {offsets = [8, 0], sizes = [64, 4], strides = [1, 1]} : vector<112x4xf32> to vector<64x4xf32>
    %c1 = arith.constant 1 : index
    %c0_42 = arith.constant 0 : index
    %c0_43 = arith.constant 0 : index
    %93 = vector.load %arg6[%c1, %c0_42, %c0_43] : memref<9x4x4xf32, #tpu.memory_space<vmem>>, vector<1x4x4xf32>
    %94 = vector.shape_cast %93 : vector<1x4x4xf32> to vector<4x4xf32>
    %cst_44 = arith.constant dense<0.000000e+00> : vector<64x4xf32>
    %95 = tpu.matmul %92, %94, %cst_44 {dimension_numbers = #tpu.dot_dimension_numbers<[1], [0], [0], [1], [0, 0, 1, 1], [], []>} : vector<64x4xf32>, vector<4x4xf32>, vector<64x4xf32> -> vector<64x4xf32>
    %96 = arith.addf %91, %95 : vector<64x4xf32>
    %97 = vector.extract_strided_slice %58 {offsets = [9, 0], sizes = [64, 4], strides = [1, 1]} : vector<112x4xf32> to vector<64x4xf32>
    %98 = vector.broadcast %83 : vector<64x1xf32> to vector<64x4xf32>
    %99 = arith.mulf %97, %98 : vector<64x4xf32>
    %c2 = arith.constant 2 : index
    %c0_45 = arith.constant 0 : index
    %c0_46 = arith.constant 0 : index
    %100 = vector.load %arg6[%c2, %c0_45, %c0_46] : memref<9x4x4xf32, #tpu.memory_space<vmem>>, vector<1x4x4xf32>
    %101 = vector.shape_cast %100 : vector<1x4x4xf32> to vector<4x4xf32>
    %cst_47 = arith.constant dense<0.000000e+00> : vector<64x4xf32>
    %102 = tpu.matmul %99, %101, %cst_47 {dimension_numbers = #tpu.dot_dimension_numbers<[1], [0], [0], [1], [0, 0, 1, 1], [], []>} : vector<64x4xf32>, vector<4x4xf32>, vector<64x4xf32> -> vector<64x4xf32>
    %103 = arith.addf %96, %102 : vector<64x4xf32>
    %104 = vector.extract_strided_slice %58 {offsets = [23, 0], sizes = [64, 4], strides = [1, 1]} : vector<112x4xf32> to vector<64x4xf32>
    %105 = vector.broadcast %79 : vector<64x1xf32> to vector<64x4xf32>
    %106 = arith.mulf %104, %105 : vector<64x4xf32>
    %c3 = arith.constant 3 : index
    %c0_48 = arith.constant 0 : index
    %c0_49 = arith.constant 0 : index
    %107 = vector.load %arg6[%c3, %c0_48, %c0_49] : memref<9x4x4xf32, #tpu.memory_space<vmem>>, vector<1x4x4xf32>
    %108 = vector.shape_cast %107 : vector<1x4x4xf32> to vector<4x4xf32>
    %cst_50 = arith.constant dense<0.000000e+00> : vector<64x4xf32>
    %109 = tpu.matmul %106, %108, %cst_50 {dimension_numbers = #tpu.dot_dimension_numbers<[1], [0], [0], [1], [0, 0, 1, 1], [], []>} : vector<64x4xf32>, vector<4x4xf32>, vector<64x4xf32> -> vector<64x4xf32>
    %110 = arith.addf %103, %109 : vector<64x4xf32>
    %111 = vector.extract_strided_slice %58 {offsets = [24, 0], sizes = [64, 4], strides = [1, 1]} : vector<112x4xf32> to vector<64x4xf32>
    %c4 = arith.constant 4 : index
    %c0_51 = arith.constant 0 : index
    %c0_52 = arith.constant 0 : index
    %112 = vector.load %arg6[%c4, %c0_51, %c0_52] : memref<9x4x4xf32, #tpu.memory_space<vmem>>, vector<1x4x4xf32>
    %113 = vector.shape_cast %112 : vector<1x4x4xf32> to vector<4x4xf32>
    %cst_53 = arith.constant dense<0.000000e+00> : vector<64x4xf32>
    %114 = tpu.matmul %111, %113, %cst_53 {dimension_numbers = #tpu.dot_dimension_numbers<[1], [0], [0], [1], [0, 0, 1, 1], [], []>} : vector<64x4xf32>, vector<4x4xf32>, vector<64x4xf32> -> vector<64x4xf32>
    %115 = arith.addf %110, %114 : vector<64x4xf32>
    %116 = vector.extract_strided_slice %58 {offsets = [25, 0], sizes = [64, 4], strides = [1, 1]} : vector<112x4xf32> to vector<64x4xf32>
    %117 = vector.broadcast %83 : vector<64x1xf32> to vector<64x4xf32>
    %118 = arith.mulf %116, %117 : vector<64x4xf32>
    %c5 = arith.constant 5 : index
    %c0_54 = arith.constant 0 : index
    %c0_55 = arith.constant 0 : index
    %119 = vector.load %arg6[%c5, %c0_54, %c0_55] : memref<9x4x4xf32, #tpu.memory_space<vmem>>, vector<1x4x4xf32>
    %120 = vector.shape_cast %119 : vector<1x4x4xf32> to vector<4x4xf32>
    %cst_56 = arith.constant dense<0.000000e+00> : vector<64x4xf32>
    %121 = tpu.matmul %118, %120, %cst_56 {dimension_numbers = #tpu.dot_dimension_numbers<[1], [0], [0], [1], [0, 0, 1, 1], [], []>} : vector<64x4xf32>, vector<4x4xf32>, vector<64x4xf32> -> vector<64x4xf32>
    %122 = arith.addf %115, %121 : vector<64x4xf32>
    %123 = vector.extract_strided_slice %58 {offsets = [39, 0], sizes = [64, 4], strides = [1, 1]} : vector<112x4xf32> to vector<64x4xf32>
    %124 = vector.broadcast %79 : vector<64x1xf32> to vector<64x4xf32>
    %125 = arith.mulf %123, %124 : vector<64x4xf32>
    %c6 = arith.constant 6 : index
    %c0_57 = arith.constant 0 : index
    %c0_58 = arith.constant 0 : index
    %126 = vector.load %arg6[%c6, %c0_57, %c0_58] : memref<9x4x4xf32, #tpu.memory_space<vmem>>, vector<1x4x4xf32>
    %127 = vector.shape_cast %126 : vector<1x4x4xf32> to vector<4x4xf32>
    %cst_59 = arith.constant dense<0.000000e+00> : vector<64x4xf32>
    %128 = tpu.matmul %125, %127, %cst_59 {dimension_numbers = #tpu.dot_dimension_numbers<[1], [0], [0], [1], [0, 0, 1, 1], [], []>} : vector<64x4xf32>, vector<4x4xf32>, vector<64x4xf32> -> vector<64x4xf32>
    %129 = arith.addf %122, %128 : vector<64x4xf32>
    %130 = vector.extract_strided_slice %58 {offsets = [40, 0], sizes = [64, 4], strides = [1, 1]} : vector<112x4xf32> to vector<64x4xf32>
    %c7 = arith.constant 7 : index
    %c0_60 = arith.constant 0 : index
    %c0_61 = arith.constant 0 : index
    %131 = vector.load %arg6[%c7, %c0_60, %c0_61] : memref<9x4x4xf32, #tpu.memory_space<vmem>>, vector<1x4x4xf32>
    %132 = vector.shape_cast %131 : vector<1x4x4xf32> to vector<4x4xf32>
    %cst_62 = arith.constant dense<0.000000e+00> : vector<64x4xf32>
    %133 = tpu.matmul %130, %132, %cst_62 {dimension_numbers = #tpu.dot_dimension_numbers<[1], [0], [0], [1], [0, 0, 1, 1], [], []>} : vector<64x4xf32>, vector<4x4xf32>, vector<64x4xf32> -> vector<64x4xf32>
    %134 = arith.addf %129, %133 : vector<64x4xf32>
    %135 = vector.extract_strided_slice %58 {offsets = [41, 0], sizes = [64, 4], strides = [1, 1]} : vector<112x4xf32> to vector<64x4xf32>
    %136 = vector.broadcast %83 : vector<64x1xf32> to vector<64x4xf32>
    %137 = arith.mulf %135, %136 : vector<64x4xf32>
    %c8 = arith.constant 8 : index
    %c0_63 = arith.constant 0 : index
    %c0_64 = arith.constant 0 : index
    %138 = vector.load %arg6[%c8, %c0_63, %c0_64] : memref<9x4x4xf32, #tpu.memory_space<vmem>>, vector<1x4x4xf32>
    %139 = vector.shape_cast %138 : vector<1x4x4xf32> to vector<4x4xf32>
    %cst_65 = arith.constant dense<0.000000e+00> : vector<64x4xf32>
    %140 = tpu.matmul %137, %139, %cst_65 {dimension_numbers = #tpu.dot_dimension_numbers<[1], [0], [0], [1], [0, 0, 1, 1], [], []>} : vector<64x4xf32>, vector<4x4xf32>, vector<64x4xf32> -> vector<64x4xf32>
    %141 = arith.addf %134, %140 : vector<64x4xf32>
    %c0_66 = arith.constant 0 : index
    %c0_67 = arith.constant 0 : index
    %142 = vector.load %arg7[%c0_66, %c0_67] : memref<1x4xf32, #tpu.memory_space<vmem>>, vector<1x4xf32>
    %143 = vector.broadcast %142 : vector<1x4xf32> to vector<64x4xf32>
    %144 = arith.mulf %141, %143 : vector<64x4xf32>
    %c0_68 = arith.constant 0 : index
    %c0_69 = arith.constant 0 : index
    %145 = vector.load %arg8[%c0_68, %c0_69] : memref<1x4xf32, #tpu.memory_space<vmem>>, vector<1x4xf32>
    %146 = vector.broadcast %145 : vector<1x4xf32> to vector<64x4xf32>
    %147 = arith.addf %144, %146 : vector<64x4xf32>
    %cst_70 = arith.constant 0.000000e+00 : f32
    %148 = vector.broadcast %cst_70 : f32 to vector<64x4xf32>
    %149 = arith.maximumf %147, %148 : vector<64x4xf32>
    %c0_71 = arith.constant 0 : index
    %c0_72 = arith.constant 0 : index
    %150 = vector.load %arg9[%c0_71, %c0_72] : memref<4x16xf32, #tpu.memory_space<vmem>>, vector<4x16xf32>
    %cst_73 = arith.constant dense<0.000000e+00> : vector<64x16xf32>
    %151 = tpu.matmul %149, %150, %cst_73 {dimension_numbers = #tpu.dot_dimension_numbers<[1], [0], [0], [1], [0, 0, 1, 1], [], []>} : vector<64x4xf32>, vector<4x16xf32>, vector<64x16xf32> -> vector<64x16xf32>
    %c0_74 = arith.constant 0 : index
    %c0_75 = arith.constant 0 : index
    %152 = vector.load %arg10[%c0_74, %c0_75] : memref<1x16xf32, #tpu.memory_space<vmem>>, vector<1x16xf32>
    %153 = vector.broadcast %152 : vector<1x16xf32> to vector<64x16xf32>
    %154 = arith.mulf %151, %153 : vector<64x16xf32>
    %c0_76 = arith.constant 0 : index
    %c0_77 = arith.constant 0 : index
    %155 = vector.load %arg11[%c0_76, %c0_77] : memref<1x16xf32, #tpu.memory_space<vmem>>, vector<1x16xf32>
    %156 = vector.broadcast %155 : vector<1x16xf32> to vector<64x16xf32>
    %157 = arith.addf %154, %156 : vector<64x16xf32>
    %158 = arith.addf %157, %10 : vector<64x16xf32>
    %cst_78 = arith.constant 0.000000e+00 : f32
    %159 = vector.broadcast %cst_78 : f32 to vector<64x16xf32>
    %160 = arith.maximumf %158, %159 : vector<64x16xf32>
    %c0_79 = arith.constant 0 : index
    %c0_80 = arith.constant 0 : index
    %c0_81 = arith.constant 0 : index
    %161 = vector.load %arg12[%c0_79, %c0_80, %c0_81] : memref<1x64x16xf32, #tpu.memory_space<vmem>>, vector<1x64x16xf32>
    %162 = vector.shape_cast %161 : vector<1x64x16xf32> to vector<64x16xf32>
    %163 = vector.shape_cast %160 : vector<64x16xf32> to vector<1x64x16xf32>
    tpu.vector_store %arg12[%c0_79, %c0_80, %c0_81], %163 {strides = array<i32>} : memref<1x64x16xf32, #tpu.memory_space<vmem>>, vector<1x64x16xf32>,
    return
  }
  func.func @transform_0(%arg0: i32, %arg1: i32) -> (i32, i32, i32) {
    %c0_i32 = arith.constant 0 : i32
    %c0_i32_0 = arith.constant 0 : i32
    %c0_i32_1 = arith.constant 0 : i32
    return %arg0, %c0_i32, %c0_i32_0 : i32, i32, i32
  }
  func.func @transform_1(%arg0: i32, %arg1: i32) -> (i32, i32) {
    %c0_i32 = arith.constant 0 : i32
    %c0_i32_0 = arith.constant 0 : i32
    %c0_i32_1 = arith.constant 0 : i32
    return %c0_i32, %c0_i32_0 : i32, i32
  }
  func.func @transform_2(%arg0: i32, %arg1: i32) -> (i32, i32) {
    %c0_i32 = arith.constant 0 : i32
    %c0_i32_0 = arith.constant 0 : i32
    %c0_i32_1 = arith.constant 0 : i32
    return %c0_i32, %c0_i32_0 : i32, i32
  }
  func.func @transform_3(%arg0: i32, %arg1: i32) -> (i32, i32) {
    %c0_i32 = arith.constant 0 : i32
    %c0_i32_0 = arith.constant 0 : i32
    %c0_i32_1 = arith.constant 0 : i32
    return %c0_i32, %c0_i32_0 : i32, i32
  }
  func.func @transform_4(%arg0: i32, %arg1: i32) -> (i32, i32, i32) {
    %c0_i32 = arith.constant 0 : i32
    %c0_i32_0 = arith.constant 0 : i32
    %c0_i32_1 = arith.constant 0 : i32
    %c0_i32_2 = arith.constant 0 : i32
    return %c0_i32, %c0_i32_0, %c0_i32_1 : i32, i32, i32
  }
  func.func @transform_5(%arg0: i32, %arg1: i32) -> (i32, i32) {
    %c0_i32 = arith.constant 0 : i32
    %c0_i32_0 = arith.constant 0 : i32
    %c0_i32_1 = arith.constant 0 : i32
    return %c0_i32, %c0_i32_0 : i32, i32
  }
  func.func @transform_6(%arg0: i32, %arg1: i32) -> (i32, i32) {
    %c0_i32 = arith.constant 0 : i32
    %c0_i32_0 = arith.constant 0 : i32
    %c0_i32_1 = arith.constant 0 : i32
    return %c0_i32, %c0_i32_0 : i32, i32
  }
  func.func @transform_7(%arg0: i32, %arg1: i32) -> (i32, i32) {
    %c0_i32 = arith.constant 0 : i32
    %c0_i32_0 = arith.constant 0 : i32
    %c0_i32_1 = arith.constant 0 : i32
    return %c0_i32, %c0_i32_0 : i32, i32
  }
  func.func @transform_8(%arg0: i32, %arg1: i32) -> (i32, i32) {
    %c0_i32 = arith.constant 0 : i32
    %c0_i32_0 = arith.constant 0 : i32
    %c0_i32_1 = arith.constant 0 : i32
    return %c0_i32, %c0_i32_0 : i32, i32
  }
  func.func @transform_9(%arg0: i32, %arg1: i32) -> (i32, i32) {
    %c0_i32 = arith.constant 0 : i32
    %c0_i32_0 = arith.constant 0 : i32
    %c0_i32_1 = arith.constant 0 : i32
    return %c0_i32, %c0_i32_0 : i32, i32
  }
  func.func @transform_10(%arg0: i32, %arg1: i32) -> (i32, i32, i32) {
    %c0_i32 = arith.constant 0 : i32
    %c0_i32_0 = arith.constant 0 : i32
    return %arg0, %arg1, %c0_i32 : i32, i32, i32
  }
}

</mosaic_0001>

<bundles_post_ra>
// kernel: bottleneck_forward.1
= control target key start
LH: loop header
LB: loop body
LE: loop exit
PB: predicated region body
PF: predicated region fallthrough
CT: control target
= control target key end

     0   :  { %s3316_s13 = smov 0   ;;  %s3318_s14 = smov 0   ;;  %s4029_s0 = inlined_call_operand.vmem [shape: f32[2,256,16], index: 0, kind: input, shape index: {}]   ;;  %s4030_s1 = inlined_call_operand.vmem [shape: f32[16,4], index: 1, kind: input, shape index: {}]   ;;  %s4031_s2 = inlined_call_operand.vmem [shape: f32[1,4], index: 2, kind: input, shape index: {}]   ;;  %s4032_s3 = inlined_call_operand.vmem [shape: f32[1,4], index: 3, kind: input, shape index: {}]   ;;  %s4033_s4 = inlined_call_operand.vmem [shape: f32[9,4,4], index: 4, kind: input, shape index: {}]   ;;  %s4034_s5 = inlined_call_operand.vmem [shape: f32[1,4], index: 5, kind: input, shape index: {}]   ;;  %s4035_s6 = inlined_call_operand.vmem [shape: f32[1,4], index: 6, kind: input, shape index: {}]   ;;  %s4036_s7 = inlined_call_operand.vmem [shape: f32[4,16], index: 7, kind: input, shape index: {}]   ;;  %s4037_s8 = inlined_call_operand.vmem [shape: f32[1,16], index: 8, kind: input, shape index: {}]   ;;  %s4038_s9 = inlined_call_operand.vmem [shape: f32[1,16], index: 9, kind: input, shape index: {}]   ;;  %s4039_s10 = inlined_call_operand.vmem [shape: f32[2,256,16], index: 10, kind: output, shape index: {}]  }
   0x1   :  { %s3320_s15 = smov 0   ;;  %s3322_s16 = smov 0  }
   0x2   :  { %s3324_s17 = smov 0  }
   0x3 LB: > { %s29_s18 = sadd.s32 1, %s3249_s15  ;;  %s32_s19 = sadd.s32 1, %s3253_s16  ;;  %s3257_s17 = sphi %s3324_s17, %s20_s17   ;;  %s3253_s16 = sphi %s3322_s16, %s4057_s16   ;;  %s3249_s15 = sphi %s3320_s15, %s4056_s15   ;;  %s3245_s14 = sphi %s3318_s14, %s4055_s14   ;;  %s3241_s13 = sphi %s3316_s13, %s4054_s13  }
   0x4   : > { %p30_p0 = scmp.ge.s32.totalorder %s29_s18, 4  ;;  %p2686_p1 = scmp.ge.s32.totalorder %s3257_s17, 1 }
   0x5   : > { %p326_p2 = scmp.lt.s32.totalorder %s3257_s17, 9 }
   0x6   : > { %s4059_s18 = smov (%p30_p0, %s29_s18), 0  ;;  %s4061_s19 = smov (!%p30_p0, %s32_s19), %s3253_s16 }
   0x7   : > { %p327_p3 = pnand %p2686_p1, %p326_p2  ;;  %p34_p4 = scmp.ge.s32.totalorder %s4061_s19, 2 }
   0x9   : > { %s4063_s19 = smov (%p34_p4, %s4061_s19), 0  ;;  %330 = sbr.rel (%p327_p3) target bundleno = 780 (0x30c), region = 60 }
  0x10   : > { %v405_v0 = vld [vmem:[%s4030_s1] sm:$0xff]  ;;  %v406_v1 = vld [vmem:[%s4030_s1 + $0x8] sm:$0xff]  ;;  %p368_p5 = scmp.lt.s32.totalorder %s3245_s14, 1  ;;  %s2692_s24 = sshll.u32 %s3241_s13, 6  ;;  %vm407_vm0 = vcmask 130048   ;;  %vm984_vm1 = vcmask 1043456   ;;  %v761_v19 = vlaneseq }
  0x11   : > { %v3099_v2 = vpack.c.bf16 %v406_v1, %v405_v0  ;;  %s2693_s29 = sadd.s32 4294967280, %s2692_s24  ;;  %s387_s11 = sadd.s32 64, %s2692_s24  ;;  %v2716_v15 = vld [vmem:[%s4033_s4 + $0x4] sm:$0xf]  ;;  %v3405_v16 = vld [vmem:[%s4033_s4 + $0xc] sm:$0xf] }
  0x12   : > { %s4065_s14 = smov (!%p368_p5, %s3245_s14), 1  ;;  %p385_p6 = scmp.gt.s32.totalorder %s2693_s29, 0  ;;  %v3414_v17 = vld [vmem:[%s4033_s4 + $0x10] sm:$0xf]  ;;  %v3421_v18 = vld [vmem:[%s4033_s4] sm:$0xf] }
  0x13   : > { %3100 = vmatprep.subr.bf16.mxu0 %v3099_v2  ;;  %3104 = vmatprep.subr.bf16.mxu1 %v3099_v2  ;;  %s2820_s25 = sshll.u32 %s4065_s14, 8  ;;  %p388_p7 = scmp.lt.s32.totalorder %s387_s11, 240  ;;  %v762_v20 = vshrl.u32 %v761_v19, 7  ;;  %v3259_v34 = vmov 0.0   ;;  %vm922_vm8 = vcmask 1046528   ;;  %v3260_v42 = vmov 1.0  }
  0x14   : > { %3102 = vmatpush3.bf16.msra.mxu0 %v3099_v2  ;;  %3106 = vmatpush3.bf16.msra.mxu1 %v3099_v2  ;;  %s372_s28 = scalar_lea.vmem %s4029_s0, %s2820_s25  ;;  %s4067_s29 = smov (!%p385_p6, %s2693_s29), 0  ;;  %v3432_v43 = vrot.slane %v3260_v42, 1  ;;  %v3439_v49 = vrot.slane %v3260_v42, 7  ;;  %v3444_v51 = vld [vmem:[%s4031_s2] ss:$0 sm:$0xff]  ;;  %vm1102_vm11 = vcmask 1040384  }
  0x15   : > { %3108 = vmatprep.subr.bf16.mxu0 %v3099_v2  ;;  %s390_s30 = scalar_lea.vmem %s372_s28, %s2692_s24  ;;  %s399_s12 = scalar_lea.vmem %s372_s28, %s4067_s29  ;;  %2959 = vmatprep.subr.msk.mxu1 %vm984_vm1, %v2716_v15  ;;  %v764_v21 = vadd.s32 16, %v762_v20  ;;  %v766_v22 = vadd.s32 32, %v762_v20  ;;  %v763_v23 = vadd.s32 8, %v762_v20  ;;  %v774_v24 = vand.u32 15, %v762_v20  ;;  %v3453_v56 = vld [vmem:[%s4032_s3] ss:$0 sm:$0xff] }
  0x16   : > { %v3361_v3 = vld [vmem:[%s390_s30] sm:$0xff]  ;;  %v3363_v4 = vld [vmem:[%s390_s30 + $0x8] sm:$0xff]  ;;  %v3365_v5 = vld [vmem:[%s390_s30 + $0x10] sm:$0xff]  ;;  %s4069_s11 = smov (!%p388_p7, %s387_s11), 240  ;;  %v765_v26 = vadd.s32 24, %v762_v20  ;;  %v768_v28 = vadd.s32 48, %v762_v20 }
  0x17   : > { %2940 = vmatprep.mubr.msk.f32.mxu1 %vm407_vm0, %v3361_v3  ;;  %v400_v6 = vld [vmem:[%s399_s12] sm:$0xff]  ;;  %v401_v7 = vld [vmem:[%s399_s12 + $0x8] sm:$0xff]  ;;  %v3373_v8 = vld [vmem:[%s390_s30 + $0x18] sm:$0xff]  ;;  %s402_s20 = scalar_lea.vmem %s372_s28, %s4069_s11  ;;  %v788_v25 = vand.u32 15, %v764_v21  ;;  %v802_v27 = vand.u32 15, %v766_v22  ;;  %p509_p8 = scmp.gt.s32.totalorder %s3241_s13, 0 }
  0x18   : > { %2941 = vmatmul.mubr.msk.f32.vlgmr.msra.gmra.mrb[0].mxu1 %vm407_vm0, %v3363_v4  ;;  %2933 = vmatprep.mubr.msk.f32.mxu0 %vm407_vm0, %v400_v6  ;;  %v3376_v9 = vld [vmem:[%s390_s30 + $0x20] sm:$0xff]  ;;  %v404_v11 = vld [vmem:[%s402_s20 + $0x8] sm:$0xff]  ;;  %v3386_v13 = vld [vmem:[%s390_s30 + $0x30] sm:$0xff]  ;;  %v781_v29 = vand.u32 15, %v763_v23  ;;  %vm866_vm2 = vcmp.gt.s32.totalorder %v774_v24, 0  ;;  %v767_v30 = vadd.s32 40, %v762_v20 }
  0x19   : > { %2943 = vmatprep.mubr.msk.f32.mxu1 %vm407_vm0, %v3365_v5  ;;  %4045 = vst [vmem:[#allocation2_spill] sm:$0xff] %v3376_v9  ;;  %2934 = vmatmul.mubr.msk.f32.vlgmr.msra.gmra.mrb[0].mxu0 %vm407_vm0, %v401_v7  ;;  %v403_v10 = vld [vmem:[%s402_s20] sm:$0xff]  ;;  %v3383_v12 = vld [vmem:[%s390_s30 + $0x28] sm:$0xff]  ;;  %4047 = vst [vmem:[#allocation4_spill] sm:$0xff] %v3386_v13  ;;  %vm868_vm3 = vcmp.gt.s32.totalorder %v788_v25, 0  ;;  %v795_v31 = vand.u32 15, %v765_v26 }
  0x1a   : > { %3110 = vmatpush3.bf16.msra.mxu0 %v3099_v2  ;;  %4046 = vst [vmem:[#allocation3_spill] sm:$0xff] %v3383_v12  ;;  %2956 = vmatprep.mubr.msk.f32.mxu0 %vm407_vm0, %v403_v10  ;;  %v3393_v14 = vld [vmem:[%s390_s30 + $0x38] sm:$0xff]  ;;  %v769_v32 = vadd.s32 56, %v762_v20  ;;  %vm870_vm4 = vcmp.gt.s32.totalorder %v802_v27, 0  ;;  %v816_v33 = vand.u32 15, %v768_v28  ;;  %v2708_v35 = vsel %vm866_vm2, 1.0, %v3259_v34 }
  0x1b   : > { %4048 = vst [vmem:[#allocation5_spill] sm:$0xff] %v3393_v14  ;;  %2960 = vmatpush3.msk.msra.mxu1 %vm984_vm1, %v2716_v15  ;;  %3001 = vmatprep.subr.msk.mxu0 %vm984_vm1, %v3405_v16  ;;  %s3426_s29 = scalar_select %p509_p8, 1, 0  ;;  %vm891_vm5 = vcmp.lt.s32.totalorder %v781_v29, 15  ;;  %v2709_v36 = vsel %vm868_vm3, 1.0, %v3259_v34  ;;  %v809_v37 = vand.u32 15, %v767_v30 }
  0x1c   : > { %2944 = vmatmul.mubr.msk.f32.gmra.mrb[2].mxu1 %vm407_vm0, %v3373_v8  ;;  %2973 = vmatprep.subr.msk.mxu1 %vm984_vm1, %v3421_v18  ;;  %p755_p9 = scmp.lt.s32.totalorder %s3241_s13, 3  ;;  %v2710_v38 = vsel %vm870_vm4, 1.0, %v3259_v34  ;;  %vm893_vm6 = vcmp.lt.s32.totalorder %v795_v31, 15  ;;  %v823_v39 = vand.u32 15, %v769_v32  ;;  %v3429_v40 = vrot.slane %v2708_v35, 1  ;;  %s2689_s27 = sshll.u32 %s3241_s13, 3 }
  0x1d   : > { %2946 = vmatprep.mubr.msk.f32.mxu1 %vm407_vm0, %v3376_v9  ;;  %2957 = vmatmul.mubr.msk.f32.vlgmr.msra.gmra.mrb[2].mxu0 %vm407_vm0, %v404_v11  ;;  %vm872_vm7 = vcmp.gt.s32.totalorder %v816_v33, 0  ;;  %v2712_v41 = vsel %vm891_vm5, 1.0, %v3259_v34  ;;  %s511_s30 = scvt.s32.f32 %s3426_s29  ;;  %v926_v44 = vrot.slane %v2709_v36, 1  ;;  %v930_v46 = vrot.slane %v2710_v38, 1  ;;  %p376_p10 = scmp.lt.s32.totalorder %s2689_s27, 31 }
  0x1e   : > { %3002 = vmatpush3.msk.msra.mxu0 %vm984_vm1, %v3405_v16  ;;  %s3434_s11 = scalar_select %p755_p9, 1, 0  ;;  %v3437_v45 = vmul.f32 0.0, %v3429_v40  ;;  %v2713_v47 = vsel %vm893_vm6, 1.0, %v3259_v34  ;;  %vm895_vm9 = vcmp.lt.s32.totalorder %v809_v37, 15  ;;  %v2711_v48 = vsel %vm872_vm7, 1.0, %v3259_v34 }
  0x1f   : > { %3015 = vmatprep.subr.msk.mxu0 %vm984_vm1, %v3414_v17  ;;  %v1253_v50 = vrot.slane %v2712_v41, 7  ;;  %vm897_vm10 = vcmp.lt.s32.totalorder %v823_v39, 15  ;;  %v512_v52 = vstv %s511_s30  ;;  %v3448_v53 = vsel %vm922_vm8, %v3432_v43, %v926_v44  ;;  %s4071_s27 = smov (!%p376_p10, %s2689_s27), 31  ;;  %s2690_s28 = sshll.u32 %s4065_s14, 5 }
  0x20   : > { %2947 = vmatmul.mubr.msk.f32.gmra.mrb[4].mxu1 %vm407_vm0, %v3383_v12  ;;  %v1257_v54 = vrot.slane %v2713_v47, 7  ;;  %v2714_v55 = vsel %vm895_vm9, 1.0, %v3259_v34  ;;  %v3458_v58 = vsel %vm922_vm8, %v3429_v40, %v3432_v43  ;;  %s757_s23 = scvt.s32.f32 %s3434_s11  ;;  %v3463_v59 = vsel %vm922_vm8, %v926_v44, %v3432_v43  ;;  %s379_s11 = sadd.s32 %s2690_s28, %s4071_s27 }
  0x21   : > { %2949 = vmatprep.mubr.msk.f32.mxu1 %vm407_vm0, %v3386_v13  ;;  %v934_v60 = vrot.slane %v2711_v48, 1  ;;  %v2715_v61 = vsel %vm897_vm10, 1.0, %v3259_v34  ;;  %v1103_v0 = vrot.slane %v3437_v45, 7  ;;  %v3469_v1 = vsel %vm922_vm8, %v3432_v43, %v930_v46  ;;  %s2691_s21 = sshll.u32 %s379_s11, 3 }
  0x22   : > { %v3473_v2 = vsel %vm1102_vm11, %v3439_v49, %v1253_v50  ;;  %vm959_vm12 = vcmask 31744   ;;  %v3478_v7 = vsel %vm922_vm8, %v930_v46, %v3432_v43  ;;  %v3482_v10 = vsel %vm1102_vm11, %v1253_v50, %v3439_v49  ;;  %s3989_s22 = scalar_lea.vmem %s4039_s10, %s2691_s21 }
  0x23   : > { %v1261_v11 = vrot.slane %v2714_v55, 7  ;;  %v3487_v20 = vsel %vm1102_vm11, %v3439_v49, %v1257_v54  ;;  %v3491_v21 = vsel %vm1102_vm11, %v1257_v54, %v3439_v49  ;;  %v3493_v22 = vrot.slane %v2715_v61, 7 }
  0x24   : > { %2950 = vmatmul.mubr.msk.f32.gmra.mrb[6].mxu1 %vm407_vm0, %v3393_v14  ;;  %v3497_v27 = vstv %s757_s23  ;;  %v3501_v28 = vsel %vm922_vm8, %v3432_v43, %v934_v60  ;;  %v3509_v33 = vsel %vm922_vm8, %v934_v60, %v3432_v43 }
  0x25   : > { %v3517_v37 = vsel %vm1102_vm11, %v3439_v49, %v1261_v11  ;;  %v3526_v42 = vsel %vm1102_vm11, %v1261_v11, %v3439_v49  ;;  %v3531_v44 = vsel %vm1102_vm11, %v3439_v49, %v3493_v22 }
  0xeb   : > { %v2942_v57 = vpop.f32.mrb[0].mxu1 }
  0xec   : > { %v645_v62 = vmul.f32 %v2942_v57, %v3444_v51  ;;  %v605_v63 = vpop.f32.mrb[1].mxu1  ;;  %v2935_v15 = vpop.f32.mrb[0].mxu0 }
  0xed   : > { %v644_v6 = vmul.f32 %v3444_v51, %v605_v63  ;;  %v497_v23 = vmul.f32 %v2935_v15, %v3444_v51  ;;  %v480_v24 = vpop.f32.mrb[1].mxu0 }
  0xee   : > { %v653_v19 = vadd.f32 %v3453_v56, %v645_v62  ;;  %v496_v30 = vmul.f32 %v3444_v51, %v480_v24 }
  0xef   : > { %v652_v25 = vadd.f32 %v3453_v56, %v644_v6  ;;  %v2945_v26 = vpop.f32.mrb[2].mxu1  ;;  %v506_v34 = vadd.f32 %v3453_v56, %v497_v23 }
  0xf0   : > { %v3503_v29 = vmax.f32 %v653_v19, 0.0  ;;  %v647_v31 = vmul.f32 %v2945_v26, %v3444_v51  ;;  %v615_v32 = vpop.f32.mrb[3].mxu1  ;;  %v505_v38 = vadd.f32 %v3453_v56, %v496_v30  ;;  %v2958_v41 = vpop.f32.mrb[2].mxu0 }
  0xf1   : > { %v3512_v35 = vmax.f32 %v652_v25, 0.0  ;;  %v646_v36 = vmul.f32 %v3444_v51, %v615_v32  ;;  %v508_v46 = vmax.f32 %v506_v34, 0.0  ;;  %v750_v54 = vmul.f32 %v2958_v41, %v3444_v51  ;;  %v740_v55 = vpop.f32.mrb[3].mxu0 }
  0xf2   : > { %v3522_v39 = vmul.f32 %v3448_v53, %v3503_v29  ;;  %v655_v47 = vadd.f32 %v3453_v56, %v647_v31  ;;  %v507_v57 = vmax.f32 %v505_v38, 0.0  ;;  %v3541_v63 = vmul.f32 %v3469_v1, %v3503_v29 }
  0xf3   : > { %v2948_v48 = vpop.f32.mrb[4].mxu1  ;;  %v1446_v50 = vmul.f32 %v3458_v58, %v3512_v35  ;;  %v3543_v6 = vmul.f32 %v512_v52, %v508_v46  ;;  %v654_v11 = vadd.f32 %v3453_v56, %v646_v36  ;;  %v752_v25 = vadd.f32 %v3453_v56, %v750_v54 }
  0xf4   : > { %v649_v60 = vmul.f32 %v2948_v48, %v3444_v51  ;;  %v625_v61 = vpop.f32.mrb[5].mxu1  ;;  %v4040_v62 = vrot.slane %v3522_v39, 7  ;;  %v3547_v23 = vmul.f32 %v512_v52, %v507_v57  ;;  %v749_v26 = vmul.f32 %v3444_v51, %v740_v55  ;;  %v3569_v48 = vld [vmem:[%s4033_s4 + $0x8] sm:$0xf] }
  0xf5   : > { %v1466_v15 = vrot.slane %v1446_v50, 7  ;;  %v648_v19 = vmul.f32 %v3444_v51, %v625_v61  ;;  %v949_v30 = vmul.f32 %v3448_v53, %v3543_v6  ;;  %v3554_v31 = vmax.f32 %v655_v47, 0.0 }
  0xf6   : > { %v657_v24 = vadd.f32 %v3453_v56, %v649_v60  ;;  %v1445_v32 = vmul.f32 %v3429_v40, %v3543_v6  ;;  %2961 = vmatprep.mubr.msk.f32.mxu1 %vm959_vm12, %v3547_v23  ;;  %v754_v46 = vmax.f32 %v752_v25, 0.0  ;;  %v751_v47 = vadd.f32 %v3453_v56, %v749_v26 }
  0xf7   : > { %v1469_v34 = vsel %vm1102_vm11, %v1466_v15, %v4040_v62  ;;  %v2951_v52 = vpop.f32.mrb[6].mxu1  ;;  %v656_v36 = vadd.f32 %v3453_v56, %v648_v19  ;;  %v3571_v50 = vmax.f32 %v654_v11, 0.0  ;;  %2962 = vmatmul.mubr.msk.f32.vlgmr.msra.gmra.mrb[8].mxu1 %vm959_vm12, %v3543_v6  ;;  %v948_v57 = vmul.f32 %v3458_v58, %v3547_v23 }
  0xf8   : > { %v651_v38 = vmul.f32 %v2951_v52, %v3444_v51  ;;  %v635_v41 = vpop.f32.mrb[7].mxu1  ;;  %v1465_v54 = vrot.slane %v1445_v32, 7  ;;  %2964 = vmatprep.mubr.msk.f32.mxu1 %vm959_vm12, %v3512_v35  ;;  %v3580_v60 = vmax.f32 %v657_v24, 0.0  ;;  %v753_v19 = vmax.f32 %v751_v47, 0.0  ;;  %2974 = vmatpush3.msk.msra.mxu1 %vm984_vm1, %v3421_v18  ;;  %v2765_v18 = vld [vmem:[%s4033_s4 + $0x14] sm:$0xf] }
  0xf9   : > { %v650_v55 = vmul.f32 %v3444_v51, %v635_v41  ;;  %v1106_v11 = vrot.slane %v949_v30, 7  ;;  %v1104_v51 = vrot.slane %v948_v57, 7  ;;  %v950_v32 = vmul.f32 %v3463_v59, %v3512_v35  ;;  %2987 = vmatprep.subr.msk.mxu1 %vm984_vm1, %v3569_v48 }
  0xfa   : > { %v659_v61 = vadd.f32 %v3453_v56, %v651_v38  ;;  %v1467_v25 = vsel %vm1102_vm11, %v1465_v54, %v1466_v15  ;;  %v3592_v24 = vmax.f32 %v656_v36, 0.0  ;;  %v3598_v30 = vmul.f32 %v3497_v27, %v754_v46 }
  0xfb   : > { %v658_v26 = vadd.f32 %v3453_v56, %v650_v55  ;;  %3003 = vmatprep.mubr.msk.f32.mxu0 %vm959_vm12, %v1467_v25  ;;  %v3601_v56 = vmul.f32 %v3497_v27, %v753_v19  ;;  %v1110_v15 = vrot.slane %v3541_v63, 7  ;;  %2965 = vmatmul.mubr.msk.f32.gmra.mrb[10].mxu1 %vm959_vm12, %v3503_v29  ;;  %v1105_v52 = vsel %vm1102_vm11, %v1103_v0, %v1104_v51 }
  0xfc   : > { %3004 = vmatmul.mubr.msk.f32.vlgmr.msra.gmra.mrb[4].mxu0 %vm959_vm12, %v1469_v34  ;;  %v1107_v36 = vsel %vm1102_vm11, %v1104_v51, %v1106_v11  ;;  %v1108_v38 = vrot.slane %v950_v32, 7  ;;  %v3613_v41 = vmul.f32 %v3469_v1, %v3554_v31  ;;  %v3619_v27 = vmax.f32 %v659_v61, 0.0  ;;  %2967 = vmatprep.mubr.msk.f32.mxu1 %vm959_vm12, %v3571_v50 }
  0xfd   : > { %3016 = vmatpush3.msk.msra.mxu0 %vm984_vm1, %v3414_v17  ;;  %3017 = vmatprep.mubr.msk.f32.mxu0 %vm959_vm12, %v3512_v35  ;;  %v952_v45 = vmul.f32 %v3478_v7, %v3571_v50  ;;  %v953_v0 = vmul.f32 %v3501_v28, %v3554_v31  ;;  %v954_v63 = vmul.f32 %v3509_v33, %v3592_v24  ;;  %v3629_v34 = vmax.f32 %v658_v26, 0.0 }
  0xfe   : > { %3029 = vmatprep.subr.msk.mxu0 %vm984_vm1, %v2765_v18  ;;  %v1109_v17 = vsel %vm1102_vm11, %v1106_v11, %v1108_v38  ;;  %v3634_v46 = vsel %vm1102_vm11, %v1108_v38, %v1110_v15  ;;  %v1738_v47 = vmul.f32 %v3439_v49, %v3512_v35  ;;  %v1739_v61 = vmul.f32 %v3473_v2, %v3503_v29 }
  0xff   : > { %v1112_v54 = vrot.slane %v952_v45, 7  ;;  %v1114_v55 = vrot.slane %v953_v0, 7  ;;  %v1116_v57 = vrot.slane %v954_v63, 7  ;;  %2968 = vmatmul.mubr.msk.f32.gmra.mrb[12].mxu1 %vm959_vm12, %v3554_v31  ;;  %v955_v25 = vmul.f32 %v3432_v43, %v3580_v60 }
 0x100   : > { %v1758_v19 = vrot.slane %v1738_v47, 1  ;;  %v1740_v11 = vmul.f32 %v3482_v10, %v3571_v50  ;;  %v1276_v26 = vmul.f32 %v3439_v49, %v3547_v23  ;;  %2970 = vmatprep.mubr.msk.f32.mxu1 %vm959_vm12, %v3592_v24  ;;  %v1759_v45 = vrot.slane %v1739_v61, 1 }
 0x101   : > { %v3651_v51 = vsel %vm1102_vm11, %v1110_v15, %v1112_v54  ;;  %v3654_v32 = vsel %vm1102_vm11, %v1112_v54, %v1114_v55  ;;  %v3657_v38 = vsel %vm1102_vm11, %v1114_v55, %v1116_v57  ;;  %v1118_v0 = vrot.slane %v955_v25, 7  ;;  %v3667_v15 = vld [vmem:[%s4033_s4 + $0x18] sm:$0xf] }
 0x102   : > { %v1761_v63 = vrot.slane %v1740_v11, 1  ;;  %v1277_v47 = vmul.f32 %v3473_v2, %v3543_v6  ;;  %v1296_v62 = vrot.slane %v1276_v26, 1  ;;  %v3662_v23 = vsel %vm922_vm8, %v1758_v19, %v1759_v45 }
 0x103   : > { %v1741_v54 = vmul.f32 %v3487_v20, %v3554_v31  ;;  %v1278_v55 = vmul.f32 %v3482_v10, %v3512_v35  ;;  %v1742_v61 = vmul.f32 %v3491_v21, %v3592_v24  ;;  %2971 = vmatmul.mubr.msk.f32.gmra.mrb[14].mxu1 %vm959_vm12, %v3580_v60  ;;  %v3680_v6 = vsel %vm1102_vm11, %v1116_v57, %v1118_v0 }
 0x104   : > { %3018 = vmatmul.mubr.msk.f32.vlgmr.msra.gmra.mrb[4].mxu0 %vm959_vm12, %v3503_v29  ;;  %v3683_v19 = vsel %vm922_vm8, %v1759_v45, %v1761_v63  ;;  %v1297_v25 = vrot.slane %v1277_v47, 1  ;;  %v1279_v11 = vmul.f32 %v3487_v20, %v3503_v29  ;;  %2975 = vmatprep.mubr.msk.f32.mxu1 %vm959_vm12, %v1105_v52  ;;  %v1743_v14 = vmul.f32 %v3517_v37, %v3580_v60 }
 0x105   : > { %3030 = vmatpush3.msk.msra.mxu0 %vm984_vm1, %v2765_v18  ;;  %v1763_v35 = vrot.slane %v1741_v54, 1  ;;  %v1299_v26 = vrot.slane %v1278_v55, 1  ;;  %v1765_v13 = vrot.slane %v1742_v61, 1  ;;  %3020 = vmatprep.mubr.msk.f32.mxu0 %vm959_vm12, %v3571_v50  ;;  %v1280_v18 = vmul.f32 %v3491_v21, %v3571_v50 }
 0x106   : > { %3043 = vmatprep.subr.msk.mxu0 %vm984_vm1, %v3667_v15  ;;  %v3696_v57 = vsel %vm922_vm8, %v1296_v62, %v1297_v25  ;;  %v1301_v45 = vrot.slane %v1279_v11, 1  ;;  %v1744_v52 = vmul.f32 %v3526_v42, %v3629_v34  ;;  %v1767_v55 = vrot.slane %v1743_v14, 1 }
 0x107   : > { %v3703_v0 = vsel %vm922_vm8, %v1761_v63, %v1763_v35  ;;  %v3706_v47 = vsel %vm922_vm8, %v1297_v25, %v1299_v26  ;;  %v3709_v54 = vsel %vm922_vm8, %v1763_v35, %v1765_v13  ;;  %2976 = vmatmul.mubr.msk.f32.vlgmr.msra.gmra.mrb[8].mxu1 %vm959_vm12, %v1107_v36  ;;  %v1303_v61 = vrot.slane %v1280_v18, 1 }
 0x108   : > { %3021 = vmatmul.mubr.msk.f32.gmra.mrb[6].mxu0 %vm959_vm12, %v3554_v31  ;;  %v3715_v62 = vsel %vm922_vm8, %v1299_v26, %v1301_v45  ;;  %v1769_v11 = vrot.slane %v1744_v52, 1  ;;  %v1281_v63 = vmul.f32 %v3517_v37, %v3554_v31  ;;  %2978 = vmatprep.mubr.msk.f32.mxu1 %vm959_vm12, %v1109_v17  ;;  %v3723_v14 = vsel %vm922_vm8, %v1765_v13, %v1767_v55 }
 0x109   : > { %3023 = vmatprep.mubr.msk.f32.mxu0 %vm959_vm12, %v3592_v24  ;;  %v1745_v36 = vmul.f32 %v3531_v44, %v3619_v27  ;;  %v1282_v25 = vmul.f32 %v3526_v42, %v3592_v24  ;;  %v1472_v35 = vrot.slane %v3613_v41, 7  ;;  %2988 = vmatpush3.msk.msra.mxu1 %vm984_vm1, %v3569_v48  ;;  %v3733_v26 = vsel %vm922_vm8, %v1301_v45, %v1303_v61 }
 0x10a   : > { %v3736_v17 = vsel %vm922_vm8, %v1767_v55, %v1769_v11  ;;  %v1305_v18 = vrot.slane %v1281_v63, 1  ;;  %v1746_v13 = vmul.f32 %v3493_v22, %v3601_v56  ;;  %v1283_v12 = vmul.f32 %v3531_v44, %v3580_v60  ;;  %3111 = vmatprep.subr.msk.mxu1 %vm984_vm1, %v3405_v16 }
 0x10b   : > { %v1771_v52 = vrot.slane %v1745_v36, 1  ;;  %v1307_v9 = vrot.slane %v1282_v25, 1  ;;  %v1907_v41 = vmul.f32 %v3429_v40, %v3503_v29  ;;  %2979 = vmatmul.mubr.msk.f32.gmra.mrb[10].mxu1 %vm959_vm12, %v3634_v46  ;;  %v1908_v55 = vmul.f32 %v3458_v58, %v3571_v50 }
 0x10c   : > { %3024 = vmatmul.mubr.msk.f32.gmra.mrb[8].mxu0 %vm959_vm12, %v3580_v60  ;;  %v3751_v48 = vsel %vm922_vm8, %v1303_v61, %v1305_v18  ;;  %v1773_v45 = vrot.slane %v1746_v13, 1  ;;  %v1284_v63 = vmul.f32 %v3493_v22, %v3629_v34  ;;  %2981 = vmatprep.mubr.msk.f32.mxu1 %vm959_vm12, %v3651_v51  ;;  %v1309_v46 = vrot.slane %v1283_v12, 1 }
 0x10d   : > { %3026 = vmatprep.mubr.msk.f32.mxu0 %vm959_vm12, %v3629_v34  ;;  %v3762_v40 = vsel %vm922_vm8, %v1769_v11, %v1771_v52  ;;  %v3765_v29 = vsel %vm922_vm8, %v1305_v18, %v1307_v9  ;;  %v1927_v61 = vrot.slane %v1907_v41, 7  ;;  %v1928_v58 = vrot.slane %v1908_v55, 7 }
 0x10e   : > { %v3768_v36 = vsel %vm922_vm8, %v1771_v52, %v1773_v45  ;;  %v1311_v25 = vrot.slane %v1284_v63, 1  ;;  %v1909_v13 = vmul.f32 %v3448_v53, %v3554_v31  ;;  %v3773_v51 = vsel %vm922_vm8, %v1307_v9, %v1309_v46 }
 0x10f   : > { %v1448_v11 = vmul.f32 %v3463_v59, %v3571_v50  ;;  %v1910_v18 = vmul.f32 %v3463_v59, %v3592_v24  ;;  %v1911_v12 = vmul.f32 %v3469_v1, %v3580_v60  ;;  %2982 = vmatmul.mubr.msk.f32.gmra.mrb[12].mxu1 %vm959_vm12, %v3654_v32  ;;  %v3786_v53 = vsel %vm1102_vm11, %v1927_v61, %v1928_v58 }
 0x110   : > { %3027 = vmatmul.mubr.msk.f32.gmra.mrb[10].mxu0 %vm959_vm12, %v3619_v27  ;;  %v3789_v9 = vsel %vm922_vm8, %v1309_v46, %v1311_v25  ;;  %v1930_v52 = vrot.slane %v1909_v13, 7  ;;  %v1450_v41 = vmul.f32 %v3478_v7, %v3592_v24  ;;  %2984 = vmatprep.mubr.msk.f32.mxu1 %vm959_vm12, %v3657_v38  ;;  %v1912_v45 = vmul.f32 %v3478_v7, %v3629_v34  ;;  %v3809_v38 = vld [vmem:[%s4033_s4 + $0x1c] sm:$0xf] }
 0x111   : > { %3031 = vmatprep.mubr.msk.f32.mxu0 %vm959_vm12, %v3662_v23  ;;  %v1470_v59 = vrot.slane %v1448_v11, 7  ;;  %v1932_v1 = vrot.slane %v1910_v18, 7  ;;  %v1934_v32 = vrot.slane %v1911_v12, 7  ;;  %v1451_v46 = vmul.f32 %v3501_v28, %v3580_v60 }
 0x112   : > { %v3800_v55 = vsel %vm1102_vm11, %v1928_v58, %v1930_v52  ;;  %v1474_v63 = vrot.slane %v1450_v41, 7  ;;  %v1913_v61 = vmul.f32 %v3501_v28, %v3619_v27  ;;  %v4049_v23 = vrot.slane %v3522_v39, 7 }
 0x113   : > { %v3817_v7 = vsel %vm1102_vm11, %v1930_v52, %v1932_v1  ;;  %v3820_v58 = vsel %vm1102_vm11, %v1470_v59, %v1472_v35  ;;  %v3823_v13 = vsel %vm1102_vm11, %v1932_v1, %v1934_v32  ;;  %2985 = vmatmul.mubr.msk.f32.gmra.mrb[14].mxu1 %vm959_vm12, %v3680_v6  ;;  %v1936_v39 = vrot.slane %v1912_v45, 7 }
 0x114   : > { %v3814_v25 = vsel %vm1102_vm11, %v4049_v23, %v1470_v59  ;;  %3032 = vmatmul.mubr.msk.f32.vlgmr.msra.gmra.mrb[4].mxu0 %vm959_vm12, %v3683_v19  ;;  %v3830_v28 = vsel %vm1102_vm11, %v1472_v35, %v1474_v63  ;;  %v1476_v11 = vrot.slane %v1451_v46, 7  ;;  %v1938_v18 = vrot.slane %v1913_v61, 7  ;;  %2989 = vmatprep.mubr.msk.f32.mxu1 %vm959_vm12, %v3696_v57 }
 0x115   : > { %3044 = vmatpush3.msk.msra.mxu0 %vm984_vm1, %v3667_v15  ;;  %v1452_v12 = vmul.f32 %v3509_v33, %v3629_v34  ;;  %v1914_v6 = vmul.f32 %v3509_v33, %v3601_v56  ;;  %v1453_v19 = vmul.f32 %v3432_v43, %v3619_v27  ;;  %3034 = vmatprep.mubr.msk.f32.mxu0 %vm959_vm12, %v3703_v0 }
 0x116   : > { %3057 = vmatprep.subr.msk.mxu0 %vm984_vm1, %v3809_v38  ;;  %v1937_v15 = vsel %vm1102_vm11, %v1934_v32, %v1936_v39  ;;  %v1477_v35 = vsel %vm1102_vm11, %v1474_v63, %v1476_v11  ;;  %v1939_v57 = vsel %vm1102_vm11, %v1936_v39, %v1938_v18  ;;  %v1915_v33 = vmul.f32 %v3432_v43, %v3598_v30 }
 0x117   : > { %v1478_v52 = vrot.slane %v1452_v12, 7  ;;  %v1940_v41 = vrot.slane %v1914_v6, 7  ;;  %v1480_v59 = vrot.slane %v1453_v19, 7  ;;  %2990 = vmatmul.mubr.msk.f32.vlgmr.msra.gmra.mrb[8].mxu1 %vm959_vm12, %v3706_v47  ;;  %v2200_v0 = vmul.f32 %v3439_v49, %v3571_v50 }
 0x118   : > { %3035 = vmatmul.mubr.msk.f32.gmra.mrb[6].mxu0 %vm959_vm12, %v3709_v54  ;;  %v2201_v1 = vmul.f32 %v3473_v2, %v3554_v31  ;;  %v2202_v32 = vmul.f32 %v3482_v10, %v3592_v24  ;;  %2992 = vmatprep.mubr.msk.f32.mxu1 %vm959_vm12, %v3715_v62  ;;  %v1942_v45 = vrot.slane %v1915_v33, 7  ;;  %v2203_v10 = vmul.f32 %v3487_v20, %v3580_v60 }
 0x119   : > { %3037 = vmatprep.mubr.msk.f32.mxu0 %vm959_vm12, %v3723_v14  ;;  %v1479_v43 = vsel %vm1102_vm11, %v1476_v11, %v1478_v52  ;;  %v1941_v47 = vsel %vm1102_vm11, %v1938_v18, %v1940_v41  ;;  %v1481_v54 = vsel %vm1102_vm11, %v1478_v52, %v1480_v59  ;;  %3112 = vmatpush3.msk.msra.mxu1 %vm984_vm1, %v3405_v16  ;;  %v2220_v49 = vrot.slane %v2200_v0, 1 }
 0x11a   : > { %v2221_v2 = vrot.slane %v2201_v1, 1  ;;  %v2223_v63 = vrot.slane %v2202_v32, 1  ;;  %v1943_v62 = vsel %vm1102_vm11, %v1940_v41, %v1942_v45  ;;  %v2204_v14 = vmul.f32 %v3491_v21, %v3629_v34 }
 0x11b   : > { %v2205_v46 = vmul.f32 %v3517_v37, %v3619_v27  ;;  %v2206_v61 = vmul.f32 %v3526_v42, %v3601_v56  ;;  %2993 = vmatmul.mubr.msk.f32.gmra.mrb[10].mxu1 %vm959_vm12, %v3733_v26  ;;  %v2225_v23 = vrot.slane %v2203_v10, 1  ;;  %v2207_v21 = vmul.f32 %v3531_v44, %v3598_v30 }
 0x11c   : > { %3038 = vmatmul.mubr.msk.f32.gmra.mrb[8].mxu0 %vm959_vm12, %v3736_v17  ;;  %v2222_v16 = vsel %vm922_vm8, %v2220_v49, %v2221_v2  ;;  %v2224_v20 = vsel %vm922_vm8, %v2221_v2, %v2223_v63  ;;  %2995 = vmatprep.mubr.msk.f32.mxu1 %vm959_vm12, %v3751_v48  ;;  %v2227_v37 = vrot.slane %v2204_v14, 1  ;;  %v2795_v48 = vld [vmem:[%s4033_s4 + $0x20] sm:$0xf] }
 0x11d   : > { %3040 = vmatprep.mubr.msk.f32.mxu0 %vm959_vm12, %v3762_v40  ;;  %v2229_v42 = vrot.slane %v2205_v46, 1  ;;  %v2231_v26 = vrot.slane %v2206_v61, 1  ;;  %v2226_v39 = vsel %vm922_vm8, %v2223_v63, %v2225_v23  ;;  %v2233_v17 = vrot.slane %v2207_v21, 1 }
 0x11e   : > { %v2228_v11 = vsel %vm922_vm8, %v2225_v23, %v2227_v37 }
 0x11f   : > { %v2230_v18 = vsel %vm922_vm8, %v2227_v37, %v2229_v42  ;;  %v2232_v12 = vsel %vm922_vm8, %v2229_v42, %v2231_v26  ;;  %2996 = vmatmul.mubr.msk.f32.gmra.mrb[12].mxu1 %vm959_vm12, %v3765_v29  ;;  %v2234_v44 = vsel %vm922_vm8, %v2231_v26, %v2233_v17 }
 0x120   : > { %3041 = vmatmul.mubr.msk.f32.gmra.mrb[10].mxu0 %vm959_vm12, %v3768_v36  ;;  %2998 = vmatprep.mubr.msk.f32.mxu1 %vm959_vm12, %v3773_v51 }
 0x121   : > { %3045 = vmatprep.mubr.msk.f32.mxu0 %vm959_vm12, %v3786_v53  ;;  %v2805_v53 = vld [vmem:[%s4034_s5] ss:$0 sm:$0xff] }
 0x123   : > { %2999 = vmatmul.mubr.msk.f32.gmra.mrb[14].mxu1 %vm959_vm12, %v3789_v9 }
 0x124   : > { %3046 = vmatmul.mubr.msk.f32.vlgmr.msra.gmra.mrb[4].mxu0 %vm959_vm12, %v3800_v55  ;;  %3006 = vmatprep.mubr.msk.f32.mxu1 %vm959_vm12, %v3814_v25 }
 0x125   : > { %3058 = vmatpush3.msk.msra.mxu0 %vm984_vm1, %v3809_v38  ;;  %3048 = vmatprep.mubr.msk.f32.mxu0 %vm959_vm12, %v3817_v7  ;;  %v2806_v38 = vld [vmem:[%s4035_s6] ss:$0 sm:$0xff] }
 0x126   : > { %3071 = vmatprep.subr.msk.mxu0 %vm984_vm1, %v2795_v48 }
 0x127   : > { %3007 = vmatmul.mubr.msk.f32.vlgmr.msra.gmra.mrb[10].mxu1 %vm959_vm12, %v3820_v58 }
 0x128   : > { %3049 = vmatmul.mubr.msk.f32.gmra.mrb[6].mxu0 %vm959_vm12, %v3823_v13  ;;  %3009 = vmatprep.mubr.msk.f32.mxu1 %vm959_vm12, %v3830_v28 }
 0x129   : > { %3051 = vmatprep.mubr.msk.f32.mxu0 %vm959_vm12, %v1937_v15 }
 0x12b   : > { %3010 = vmatmul.mubr.msk.f32.gmra.mrb[12].mxu1 %vm959_vm12, %v1477_v35 }
 0x12c   : > { %3052 = vmatmul.mubr.msk.f32.gmra.mrb[8].mxu0 %vm959_vm12, %v1939_v57  ;;  %3012 = vmatprep.mubr.msk.f32.mxu1 %vm959_vm12, %v1479_v43 }
 0x12d   : > { %3054 = vmatprep.mubr.msk.f32.mxu0 %vm959_vm12, %v1941_v47 }
 0x12f   : > { %3013 = vmatmul.mubr.msk.f32.gmra.mrb[14].mxu1 %vm959_vm12, %v1481_v54 }
 0x130   : > { %3055 = vmatmul.mubr.msk.f32.gmra.mrb[10].mxu0 %vm959_vm12, %v1943_v62 }
 0x131   : > { %3059 = vmatprep.mubr.msk.f32.mxu0 %vm959_vm12, %v3571_v50 }
 0x134   : > { %3060 = vmatmul.mubr.msk.f32.vlgmr.msra.gmra.mrb[4].mxu0 %vm959_vm12, %v3554_v31  ;;  %v2208_v31 = vmul.f32 0.0, %v3493_v22 }
 0x135   : > { %3072 = vmatpush3.msk.msra.mxu0 %vm984_vm1, %v2795_v48  ;;  %3062 = vmatprep.mubr.msk.f32.mxu0 %vm959_vm12, %v3592_v24  ;;  %v2407_v24 = vld [vmem:[%s4036_s7] sm:$0xf] }
 0x136   : > { %v2235_v50 = vrot.slane %v2208_v31, 1  ;;  %3085 = vmatprep.subr.msk.mxu1 %vm984_vm1, %v2407_v24 }
 0x137   : > { %3086 = vmatpush3.msk.msra.mxu1 %vm984_vm1, %v2407_v24 }
 0x138   : > { %3063 = vmatmul.mubr.msk.f32.gmra.mrb[6].mxu0 %vm959_vm12, %v3580_v60  ;;  %v2236_v60 = vsel %vm922_vm8, %v2233_v17, %v2235_v50  ;;  %v2816_v17 = vld [vmem:[%s4037_s8] ss:$0 sm:$0xff] }
 0x139   : > { %3065 = vmatprep.mubr.msk.f32.mxu0 %vm959_vm12, %v3629_v34 }
 0x13c   : > { %3066 = vmatmul.mubr.msk.f32.gmra.mrb[8].mxu0 %vm959_vm12, %v3619_v27 }
 0x13d   : > { %3068 = vmatprep.mubr.msk.f32.mxu0 %vm959_vm12, %v3601_v56 }
 0x140   : > { %3069 = vmatmul.mubr.msk.f32.gmra.mrb[10].mxu0 %vm959_vm12, %v3598_v30 }
 0x141   : > { %3073 = vmatprep.mubr.msk.f32.mxu0 %vm959_vm12, %v2222_v16 }
 0x144   : > { %3074 = vmatmul.mubr.msk.f32.vlgmr.msra.gmra.mrb[4].mxu0 %vm959_vm12, %v2224_v20 }
 0x145   : > { %3076 = vmatprep.mubr.msk.f32.mxu0 %vm959_vm12, %v2226_v39 }
 0x148   : > { %3077 = vmatmul.mubr.msk.f32.gmra.mrb[6].mxu0 %vm959_vm12, %v2228_v11 }
 0x149   : > { %3079 = vmatprep.mubr.msk.f32.mxu0 %vm959_vm12, %v2230_v18  ;;  %v2817_v18 = vld [vmem:[%s4038_s9] ss:$0 sm:$0xff] }
 0x14c   : > { %3080 = vmatmul.mubr.msk.f32.gmra.mrb[8].mxu0 %vm959_vm12, %v2232_v12 }
 0x14d   : > { %3082 = vmatprep.mubr.msk.f32.mxu0 %vm959_vm12, %v2234_v44 }
 0x150   : > { %3083 = vmatmul.mubr.msk.f32.gmra.mrb[10].mxu0 %vm959_vm12, %v2236_v60 }
 0x1ea   : > { %v2991_v22 = vpop.f32.mrb[8].mxu1 }
 0x1eb   : > { %v1398_v30 = vpop.f32.mrb[9].mxu1 }
 0x1fa   : > { %v3008_v56 = vpop.f32.mrb[10].mxu1 }
 0x1fb   : > { %v1577_v27 = vpop.f32.mrb[11].mxu1 }
 0x1fe   : > { %v3011_v34 = vpop.f32.mrb[12].mxu1 }
 0x1ff   : > { %v1587_v40 = vpop.f32.mrb[13].mxu1 }
 0x202   : > { %v3014_v29 = vpop.f32.mrb[14].mxu1 }
 0x203   : > { %v1597_v36 = vpop.f32.mrb[15].mxu1 }
 0x217   : > { %v3075_v51 = vpop.f32.mrb[4].mxu0 }
 0x218   : > { %v3113_v9 = vadd.f32 %v3075_v51, %v2991_v22  ;;  %v2322_v55 = vpop.f32.mrb[5].mxu0 }
 0x219   : > { %v3114_v25 = vadd.f32 %v2322_v55, %v1398_v30 }
 0x21a   : > { %v2377_v7 = vmul.f32 %v3113_v9, %v2805_v53 }
 0x21b   : > { %v2376_v58 = vmul.f32 %v3114_v25, %v2805_v53  ;;  %v3078_v13 = vpop.f32.mrb[6].mxu0 }
 0x21c   : > { %v2392_v28 = vadd.f32 %v2806_v38, %v2377_v7  ;;  %v3115_v6 = vadd.f32 %v3078_v13, %v3008_v56  ;;  %v2332_v19 = vpop.f32.mrb[7].mxu0 }
 0x21d   : > { %v2391_v15 = vadd.f32 %v2806_v38, %v2376_v58  ;;  %v3116_v35 = vadd.f32 %v2332_v19, %v1577_v27 }
 0x21e   : > { %v2379_v57 = vmul.f32 %v3115_v6, %v2805_v53  ;;  %v2400_v33 = vmax.f32 %v2392_v28, 0.0  ;;  %v4050_v28 = vld [vmem:[#allocation3_spill] sm:$0xff] }
 0x21f   : > { %v2399_v52 = vmax.f32 %v2391_v15, 0.0  ;;  %v2378_v41 = vmul.f32 %v3116_v35, %v2805_v53  ;;  %v3081_v59 = vpop.f32.mrb[8].mxu0  ;;  %v4051_v15 = vld [vmem:[#allocation2_spill] sm:$0xff] }
 0x220   : > { %v2394_v0 = vadd.f32 %v2806_v38, %v2379_v57  ;;  %v3117_v1 = vadd.f32 %v3081_v59, %v3011_v34  ;;  %v2342_v32 = vpop.f32.mrb[9].mxu0 }
 0x221   : > { %v2393_v43 = vadd.f32 %v2806_v38, %v2378_v41  ;;  %v3118_v47 = vadd.f32 %v2342_v32, %v1587_v40  ;;  %3087 = vmatprep.mubr.msk.f32.mxu1 %vm959_vm12, %v2399_v52 }
 0x222   : > { %v2381_v54 = vmul.f32 %v3117_v1, %v2805_v53  ;;  %3088 = vmatmul.mubr.msk.f32.vlgmr.msra.gmra.mrb[16].mxu1 %vm959_vm12, %v2400_v33  ;;  %v2402_v63 = vmax.f32 %v2394_v0, 0.0  ;;  %v4052_v33 = vld [vmem:[#allocation5_spill] sm:$0xff]  ;;  %v4053_v1 = vld [vmem:[#allocation4_spill] sm:$0xff] }
 0x223   : > { %v2401_v45 = vmax.f32 %v2393_v43, 0.0  ;;  %v2380_v49 = vmul.f32 %v3118_v47, %v2805_v53  ;;  %v3084_v2 = vpop.f32.mrb[10].mxu0 }
 0x224   : > { %v2396_v10 = vadd.f32 %v2806_v38, %v2381_v54  ;;  %v3119_v62 = vadd.f32 %v3084_v2, %v3014_v29  ;;  %v2352_v14 = vpop.f32.mrb[11].mxu0 }
 0x225   : > { %v2395_v46 = vadd.f32 %v2806_v38, %v2380_v49  ;;  %v3120_v61 = vadd.f32 %v2352_v14, %v1597_v36  ;;  %3090 = vmatprep.mubr.msk.f32.mxu1 %vm959_vm12, %v2401_v45 }
 0x226   : > { %v2383_v16 = vmul.f32 %v3119_v62, %v2805_v53  ;;  %3091 = vmatmul.mubr.msk.f32.gmra.mrb[18].mxu1 %vm959_vm12, %v2402_v63  ;;  %v2404_v21 = vmax.f32 %v2396_v10, 0.0 }
 0x227   : > { %v2403_v20 = vmax.f32 %v2395_v46, 0.0  ;;  %v2382_v23 = vmul.f32 %v3120_v61, %v2805_v53 }
 0x228   : > { %v2398_v37 = vadd.f32 %v2806_v38, %v2383_v16 }
 0x229   : > { %v2397_v42 = vadd.f32 %v2806_v38, %v2382_v23  ;;  %3093 = vmatprep.mubr.msk.f32.mxu1 %vm959_vm12, %v2403_v20 }
 0x22a   : > { %3094 = vmatmul.mubr.msk.f32.gmra.mrb[20].mxu1 %vm959_vm12, %v2404_v21  ;;  %v2406_v39 = vmax.f32 %v2398_v37, 0.0 }
 0x22b   : > { %v2405_v26 = vmax.f32 %v2397_v42, 0.0 }
 0x22d   : > { %3096 = vmatprep.mubr.msk.f32.mxu1 %vm959_vm12, %v2405_v26 }
 0x22e   : > { %3097 = vmatmul.mubr.msk.f32.gmra.mrb[22].mxu1 %vm959_vm12, %v2406_v39 }
 0x2f5   : > { %v3089_v11 = vpop.f32.mrb[16].mxu1 }
 0x2f6   : > { %v2548_v12 = vmul.f32 %v3089_v11, %v2816_v17  ;;  %v2501_v44 = vpop.f32.mrb[17].mxu1 }
 0x2f7   : > { %v2547_v48 = vmul.f32 %v2816_v17, %v2501_v44 }
 0x2f8   : > { %v2563_v31 = vadd.f32 %v2817_v18, %v2548_v12 }
 0x2f9   : > { %v2562_v50 = vadd.f32 %v2817_v18, %v2547_v48  ;;  %v3092_v60 = vpop.f32.mrb[18].mxu1 }
 0x2fa   : > { %v2571_v24 = vadd.f32 %v2563_v31, %v3363_v4  ;;  %v2550_v22 = vmul.f32 %v3092_v60, %v2816_v17  ;;  %v2511_v30 = vpop.f32.mrb[19].mxu1 }
 0x2fb   : > { %v2570_v56 = vadd.f32 %v2562_v50, %v3361_v3  ;;  %v2549_v27 = vmul.f32 %v2816_v17, %v2511_v30 }
 0x2fc   : > { %v2579_v34 = vmax.f32 %v2571_v24, 0.0  ;;  %v2565_v40 = vadd.f32 %v2817_v18, %v2550_v22 }
 0x2fd   : > { %v2578_v29 = vmax.f32 %v2570_v56, 0.0  ;;  %v2564_v36 = vadd.f32 %v2817_v18, %v2549_v27  ;;  %v3095_v51 = vpop.f32.mrb[20].mxu1 }
 0x2fe   : > { %2587 = vst.msk [vmem:[%s3989_s22 + $0x8] sm:$0xff] %vm407_vm0, %v2579_v34  ;;  %v2573_v4 = vadd.f32 %v2565_v40, %v3373_v8  ;;  %v2552_v53 = vmul.f32 %v3095_v51, %v2816_v17  ;;  %v2521_v9 = vpop.f32.mrb[21].mxu1 }
 0x2ff   : > { %2586 = vst.msk [vmem:[%s3989_s22] sm:$0xff] %vm407_vm0, %v2578_v29  ;;  %v2572_v55 = vadd.f32 %v2564_v36, %v3365_v5  ;;  %v2551_v38 = vmul.f32 %v2816_v17, %v2521_v9 }
 0x300   : > { %v2581_v3 = vmax.f32 %v2573_v4, 0.0  ;;  %v2567_v25 = vadd.f32 %v2817_v18, %v2552_v53 }
 0x301   : > { %v2580_v7 = vmax.f32 %v2572_v55, 0.0  ;;  %v2566_v58 = vadd.f32 %v2817_v18, %v2551_v38  ;;  %v3098_v13 = vpop.f32.mrb[22].mxu1 }
 0x302   : > { %2589 = vst.msk [vmem:[%s3989_s22 + $0x18] sm:$0xff] %vm407_vm0, %v2581_v3  ;;  %v2575_v6 = vadd.f32 %v2567_v25, %v4050_v28  ;;  %v2554_v8 = vmul.f32 %v3098_v13, %v2816_v17  ;;  %v2531_v19 = vpop.f32.mrb[23].mxu1 }
 0x303   : > { %2588 = vst.msk [vmem:[%s3989_s22 + $0x10] sm:$0xff] %vm407_vm0, %v2580_v7  ;;  %v2574_v5 = vadd.f32 %v2566_v58, %v4051_v15  ;;  %v2553_v35 = vmul.f32 %v2816_v17, %v2531_v19 }
 0x304   : > { %v2583_v57 = vmax.f32 %v2575_v6, 0.0  ;;  %v2569_v52 = vadd.f32 %v2817_v18, %v2554_v8 }
 0x305   : > { %v2582_v41 = vmax.f32 %v2574_v5, 0.0  ;;  %v2568_v59 = vadd.f32 %v2817_v18, %v2553_v35 }
 0x306   : > { %2591 = vst.msk [vmem:[%s3989_s22 + $0x28] sm:$0xff] %vm407_vm0, %v2583_v57  ;;  %v2577_v0 = vadd.f32 %v2569_v52, %v4052_v33 }
 0x307   : > { %2590 = vst.msk [vmem:[%s3989_s22 + $0x20] sm:$0xff] %vm407_vm0, %v2582_v41  ;;  %v2576_v32 = vadd.f32 %v2568_v59, %v4053_v1 }
 0x308   : > { %v2585_v43 = vmax.f32 %v2577_v0, 0.0 }
 0x309   : > { %v2584_v47 = vmax.f32 %v2576_v32, 0.0 }
 0x30a   : > { %2593 = vst.msk [vmem:[%s3989_s22 + $0x38] sm:$0xff] %vm407_vm0, %v2585_v43 }
 0x30b   : > { %2592 = vst.msk [vmem:[%s3989_s22 + $0x30] sm:$0xff] %vm407_vm0, %v2584_v47 }
 0x30c PF: > { %s20_s17 = sadd.s32 1, %s3257_s17   ;;  %s4054_s13 = smov %s3249_s15 }
 0x30d   : > { %p17_p11 = scmp.ge.s32.totalorder %s20_s17, 10   ;;  %s4055_s14 = smov %s3253_s16 }
 0x30e   : > { %s4056_s15 = smov %s4059_s18  ;;  %s4057_s16 = smov %s4063_s19 }
 0x30f   :  { %19 = sbr.rel (!%p17_p11) target bundleno = 3 (0x3), region = 101 }

</bundles_post_ra>
